<compile_context>
chip_gen: v7x
topology: tpu7x:2x2x1
jax: 0.10.0
libtpu: 0.0.40
codegen_flags: <defaults>
</compile_context>

<pallas_src>
import jax
import jax.numpy as jnp
from jax.experimental import pallas as pl
from jax.experimental.pallas import tpu as pltpu


# ----------------------------------------------------------------------------
# Position encoding (same formula as the PyTorch helper).
# ----------------------------------------------------------------------------
def position_encoding_weights(T, E):
    sden = float(max(T - 1, 1))
    eden = float(max(E - 1, 1))
    s = jnp.arange(T, dtype=jnp.float32)[:, None]
    e = jnp.arange(E, dtype=jnp.float32)[None, :]
    return 1.0 - s / sden - e / eden * (1.0 - 2.0 * s / sden)      # (T, E)


# ----------------------------------------------------------------------------
# Fused bidirectional-GRU Pallas kernel (both directions, all timesteps).
# ----------------------------------------------------------------------------
def bigru_pallas(x_flat, wih_bd, whh_bd, b_gi, b_hn, *, B, T, H):
    """x_flat : (T*B, 2E) f32, row t*B+b = [x_pe[t, b] | x_pe[T-1-t, b]]
       wih_bd : (2E, 6H) f32  block-diagonal input weights, gate columns
                ordered [r_f, r_b, z_f, z_b, n_f, n_b]
       whh_bd : (2H, 6H) bf16 block-diagonal recurrent weights (same columns)
       b_gi   : (1, 6H) f32   b_ih (+ folded b_hh for r/z), same column order
       b_hn   : (1, 2H) f32   n-gate hidden bias [b_hn_f | b_hn_b]
       returns (B, T*H) f32   facts, lane-dense: lanes p*H:(p+1)*H = facts[:, p]
    """
    E2 = x_flat.shape[-1]
    H2, H6 = 2 * H, 6 * H

    def kernel(x_ref, wih_ref, whh_ref, bgi_ref, bhn_ref, out_ref):
        # -- prologue: every gate pre-activation, both directions, all t -----
        gi_all = jnp.dot(x_ref[...], wih_ref[...],
                         preferred_element_type=jnp.float32) + bgi_ref[...]
        # hoist the lane splits of the non-recurrent side out of the loop
        gi_r = gi_all[:, 0:H2]                             # (T*B, 2H)
        gi_z = gi_all[:, H2:2 * H2]
        gi_n = gi_all[:, 2 * H2:3 * H2]

        w_hh = whh_ref[...]                                # (2H, 6H) bf16
        b_n = jnp.broadcast_to(bhn_ref[...], (B, H2))      # hoisted broadcast

        h = jnp.zeros((B, H2), jnp.float32)                # [h_fwd | h_bwd]
        outs = []
        for s in range(T):                                 # static unroll
            rows = slice(s * B, (s + 1) * B)
            if s == 0:
                # h0 == 0 -> the recurrent matmul is identically zero.
                r = jax.nn.sigmoid(gi_r[rows])
                z = jax.nn.sigmoid(gi_z[rows])
                n = jnp.tanh(gi_n[rows] + r * b_n)
                h = (1.0 - z) * n
            else:
                # ONE fused bf16 matmul for all 3 gates x both directions.
                gh = jnp.dot(h.astype(jnp.bfloat16), w_hh,
                             preferred_element_type=jnp.float32)   # (B, 6H)
                r = jax.nn.sigmoid(gi_r[rows] + gh[:, 0:H2])
                z = jax.nn.sigmoid(gi_z[rows] + gh[:, H2:2 * H2])
                n = jnp.tanh(gi_n[rows] + r * (gh[:, 2 * H2:3 * H2] + b_n))
                h = (1.0 - z) * n + z * h
            outs.append(h)

            # -- fold bidirectional combine (time reverse + add) into loop --
            # facts[p] = h_fwd(step p) + h_bwd(step T-1-p); finalize the pair
            # (s, T-1-s) as soon as both halves exist so all but the last
            # pair's stores hide under later-step MXU/EUP latency.
            p = T - 1 - s
            if p < s:
                out_ref[:, s * H:(s + 1) * H] = outs[s][:, :H] + outs[p][:, H:]
                out_ref[:, p * H:(p + 1) * H] = outs[p][:, :H] + outs[s][:, H:]
            elif p == s:
                out_ref[:, s * H:(s + 1) * H] = outs[s][:, :H] + outs[s][:, H:]

    grid_spec = pltpu.PrefetchScalarGridSpec(
        num_scalar_prefetch=0,
        grid=(1,),                              # single fused instance
        in_specs=[
            pl.BlockSpec((T * B, E2), lambda i: (0, 0)),    # x_flat
            pl.BlockSpec((E2, H6), lambda i: (0, 0)),       # W_ih (block diag)
            pl.BlockSpec((H2, H6), lambda i: (0, 0)),       # W_hh (block diag)
            pl.BlockSpec((1, H6), lambda i: (0, 0)),        # gi bias
            pl.BlockSpec((1, H2), lambda i: (0, 0)),        # n-gate hidden bias
        ],
        out_specs=pl.BlockSpec((B, T * H), lambda i: (0, 0)),
    )
    return pl.pallas_call(
        kernel,
        out_shape=jax.ShapeDtypeStruct((B, T * H), jnp.float32),
        grid_spec=grid_spec,
        compiler_params=pltpu.CompilerParams(
            dimension_semantics=("arbitrary",)),
    )(x_flat, wih_bd, whh_bd, b_gi, b_hn)


# ----------------------------------------------------------------------------
# One-time host-side weight packing into the fused block-diagonal layout.
# Column order of the 6H gate axis: [r_f, r_b, z_f, z_b, n_f, n_b]
# (gate g, direction d -> column block 2*g + d).
# ----------------------------------------------------------------------------
def pack_params_for_kernel(params):
    wihT, whhT = params["wihT"], params["whhT"]        # (2,3,E,H), (2,3,H,H)
    bih, bhh = params["bih"], params["bhh"]            # (2,3,H)
    _, _, E, H = wihT.shape

    wih_bd = jnp.zeros((2 * E, 6 * H), jnp.float32)
    whh_bd = jnp.zeros((2 * H, 6 * H), jnp.float32)
    b_gi = jnp.zeros((6 * H,), jnp.float32)
    for d in range(2):
        for g in range(3):
            c = (2 * g + d) * H
            wih_bd = wih_bd.at[d * E:(d + 1) * E, c:c + H].set(wihT[d, g])
            whh_bd = whh_bd.at[d * H:(d + 1) * H, c:c + H].set(whhT[d, g])
            # r/z hidden biases fold into the input-side bias; the n-gate
            # hidden bias must stay inside r * (.), so it is kept separate.
            bias = (bih[d, g] + bhh[d, g]) if g < 2 else bih[d, g]
            b_gi = b_gi.at[c:c + H].set(bias)
    b_hn = jnp.concatenate([bhh[0, 2], bhh[1, 2]])      # (2H,) = [n_f | n_b]
    return {
        "wih_bd": wih_bd,                               # (2E, 6H) f32
        "whh_bd": whh_bd.astype(jnp.bfloat16),          # (2H, 6H) bf16
        "b_gi": b_gi.reshape(1, 6 * H),
        "b_hn": b_hn.reshape(1, 2 * H),
    }


# ----------------------------------------------------------------------------
# InputModule.forward (eval mode)
# ----------------------------------------------------------------------------
def input_module_forward(contexts, emb_table, packed):
    """contexts: (B, T) int32 token ids -> facts: (B, T, H) float32."""
    B, T = contexts.shape
    E = emb_table.shape[1]
    H = packed["b_hn"].shape[-1] // 2

    x = jnp.take(emb_table, contexts, axis=0)                     # (B, T, E)
    # TODO(synk): dropout(p=0.1) treated as identity (eval / inference mode).
    x_pe = x * position_encoding_weights(T, E)[None]              # (B, T, E)
    x_tm = jnp.transpose(x_pe, (1, 0, 2))                         # (T, B, E)
    # forward copy | time-reversed copy, so the kernel never re-indexes time
    x_pair = jnp.concatenate([x_tm, x_tm[::-1]], axis=-1)         # (T, B, 2E)
    x_flat = x_pair.reshape(T * B, 2 * E)

    out = bigru_pallas(x_flat, packed["wih_bd"], packed["whh_bd"],
                       packed["b_gi"], packed["b_hn"], B=B, T=T, H=H)
    return out.reshape(B, T, H)                 # free row-major reshape


# ----------------------------------------------------------------------------
# Pure-JAX reference (lax.scan GRU) for correctness check
# ----------------------------------------------------------------------------
def input_module_reference(contexts, emb_table, params):
    B, T = contexts.shape
    E = emb_table.shape[1]
    x = jnp.take(emb_table, contexts, axis=0) * position_encoding_weights(T, E)[None]
    xs = jnp.transpose(x, (1, 0, 2))                     # (T, B, E)

    def run_dir(seq, wih, whh, bih, bhh):
        def step(h, xt):
            gi = jnp.einsum("be,geh->gbh", xt, wih) + bih[:, None, :]
            gh = jnp.einsum("bh,ghk->gbk", h, whh) + bhh[:, None, :]
            r = jax.nn.sigmoid(gi[0] + gh[0])
            z = jax.nn.sigmoid(gi[1] + gh[1])
            n = jnp.tanh(gi[2] + r * gh[2])
            h_new = (1.0 - z) * n + z * h
            return h_new, h_new
        h0 = jnp.zeros((seq.shape[1], whh.shape[-1]), jnp.float32)
        _, outs = jax.lax.scan(step, h0, seq)
        return outs

    fwd = run_dir(xs, params["wihT"][0], params["whhT"][0],
                  params["bih"][0], params["bhh"][0])
    bwd = run_dir(xs[::-1], params["wihT"][1], params["whhT"][1],
                  params["bih"][1], params["bhh"][1])[::-1]
    return jnp.transpose(fwd + bwd, (1, 0, 2))


# ----------------------------------------------------------------------------
# Deterministic parameter init (xavier-normal weights, uniform biases).
# ----------------------------------------------------------------------------
def init_params(key, input_size, hidden_size):
    E, H = input_size, hidden_size
    k = jax.random.split(key, 4)

    def xavier(rng, fan_out, fan_in, shape):
        std = jnp.sqrt(2.0 / (fan_in + fan_out))
        return std * jax.random.normal(rng, shape, jnp.float32)

    # Gate-split, pre-transposed: x @ wihT[d,g] / h @ whhT[d,g]; gate order
    # (r, z, n).  NOTE: if importing real PyTorch weights, split the 3H axis
    # of the untransposed (3H, X) tensors into (r, z, n) BEFORE transposing.
    wihT = xavier(k[0], 3 * H, E, (2, 3, E, H))
    whhT = xavier(k[1], 3 * H, H, (2, 3, H, H))
    bound = 1.0 / (H ** 0.5)                 # nn.GRU default bias init range
    bih = jax.random.uniform(k[2], (2, 3, H), jnp.float32, -bound, bound)
    bhh = jax.random.uniform(k[3], (2, 3, H), jnp.float32, -bound, bound)
    return {"wihT": wihT, "whhT": whhT, "bih": bih, "bhh": bhh}


if __name__ == "__main__":
    B, T = 2, 8                  # batch, #sentence (sequence length)
    E, H = 32, 32                # embedding/input size, hidden size
    VOCAB = 50

    key = jax.random.PRNGKey(0)
    k_emb, k_ctx, k_par = jax.random.split(key, 3)

    emb_table = 0.1 * jax.random.normal(k_emb, (VOCAB, E), jnp.float32)
    contexts = jax.random.randint(k_ctx, (B, T), 0, VOCAB, jnp.int32)
    params = init_params(k_par, E, H)
    packed = pack_params_for_kernel(params)   # one-time host-side weight prep

    facts = jax.block_until_ready(input_module_forward(contexts, emb_table, packed))
    ref = jax.block_until_ready(input_module_reference(contexts, emb_table, params))

    assert facts.shape == (B, T, H)
    err = float(jnp.max(jnp.abs(facts - ref)))
    # Tolerance accounts for the bf16 recurrent matmul (perf-review item 2);
    # facts are O(0.1-0.5) so 5e-3 still catches any structural error.
    assert jnp.allclose(facts, ref, rtol=1e-3, atol=5e-3), f"max abs err {err}"
    print("KERNEL_OK")
</pallas_src>

<mosaic_0001>
module attributes {stable_mosaic.version = 11 : i64} {
  func.func @kernel(%arg0: i32, %arg1: memref<16x64xf32, #tpu.memory_space<vmem>>, %arg2: memref<64x192xf32, #tpu.memory_space<vmem>>, %arg3: memref<64x192xbf16, #tpu.memory_space<vmem>>, %arg4: memref<1x192xf32, #tpu.memory_space<vmem>>, %arg5: memref<1x64xf32, #tpu.memory_space<vmem>>, %arg6: memref<2x256xf32, #tpu.memory_space<vmem>>) attributes {dimension_semantics = [#tpu.dimension_semantics<arbitrary>], iteration_bounds = array<i64: 1>, scalar_prefetch = 0 : i64, scratch_operands = 0 : i64, tpu.core_type = #tpu.core_type<tc>, window_params = [{pipeline_mode = #tpu.pipeline_mode<synchronous>, transform_indices = @transform_0, window_bounds = array<i64: 16, 64>}, {pipeline_mode = #tpu.pipeline_mode<synchronous>, transform_indices = @transform_1, window_bounds = array<i64: 64, 192>}, {pipeline_mode = #tpu.pipeline_mode<synchronous>, transform_indices = @transform_2, window_bounds = array<i64: 64, 192>}, {pipeline_mode = #tpu.pipeline_mode<synchronous>, transform_indices = @transform_3, window_bounds = array<i64: 1, 192>}, {pipeline_mode = #tpu.pipeline_mode<synchronous>, transform_indices = @transform_4, window_bounds = array<i64: 1, 64>}, {pipeline_mode = #tpu.pipeline_mode<synchronous>, transform_indices = @transform_5, window_bounds = array<i64: 2, 256>}]} {
    %c0 = arith.constant 0 : index
    %c0_0 = arith.constant 0 : index
    %0 = vector.load %arg1[%c0, %c0_0] : memref<16x64xf32, #tpu.memory_space<vmem>>, vector<16x64xf32>
    %c0_1 = arith.constant 0 : index
    %c0_2 = arith.constant 0 : index
    %1 = vector.load %arg2[%c0_1, %c0_2] : memref<64x192xf32, #tpu.memory_space<vmem>>, vector<64x192xf32>
    %cst = arith.constant dense<0.000000e+00> : vector<16x192xf32>
    %2 = tpu.matmul %0, %1, %cst {dimension_numbers = #tpu.dot_dimension_numbers<[1], [0], [0], [1], [0, 0, 1, 1], [], []>} : vector<16x64xf32>, vector<64x192xf32>, vector<16x192xf32> -> vector<16x192xf32>
    %c0_3 = arith.constant 0 : index
    %c0_4 = arith.constant 0 : index
    %3 = vector.load %arg4[%c0_3, %c0_4] : memref<1x192xf32, #tpu.memory_space<vmem>>, vector<1x192xf32>
    %4 = vector.broadcast %3 : vector<1x192xf32> to vector<16x192xf32>
    %5 = arith.addf %2, %4 : vector<16x192xf32>
    %6 = vector.extract_strided_slice %5 {offsets = [0, 0], sizes = [16, 64], strides = [1, 1]} : vector<16x192xf32> to vector<16x64xf32>
    %7 = vector.extract_strided_slice %5 {offsets = [0, 64], sizes = [16, 64], strides = [1, 1]} : vector<16x192xf32> to vector<16x64xf32>
    %8 = vector.extract_strided_slice %5 {offsets = [0, 128], sizes = [16, 64], strides = [1, 1]} : vector<16x192xf32> to vector<16x64xf32>
    %c0_5 = arith.constant 0 : index
    %c0_6 = arith.constant 0 : index
    %9 = vector.load %arg3[%c0_5, %c0_6] : memref<64x192xbf16, #tpu.memory_space<vmem>>, vector<64x192xbf16>
    %c0_7 = arith.constant 0 : index
    %c0_8 = arith.constant 0 : index
    %10 = vector.load %arg5[%c0_7, %c0_8] : memref<1x64xf32, #tpu.memory_space<vmem>>, vector<1x64xf32>
    %11 = vector.shape_cast %10 : vector<1x64xf32> to vector<1x64xf32>
    %12 = vector.broadcast %11 : vector<1x64xf32> to vector<2x64xf32>
    %13 = vector.extract_strided_slice %6 {offsets = [0, 0], sizes = [2, 64], strides = [1, 1]} : vector<16x64xf32> to vector<2x64xf32>
    %14 = arith.negf %13 : vector<2x64xf32>
    %15 = math.exp %14 : vector<2x64xf32>
    %cst_9 = arith.constant 1.000000e+00 : f32
    %16 = vector.broadcast %cst_9 : f32 to vector<2x64xf32>
    %17 = arith.addf %16, %15 : vector<2x64xf32>
    %18 = arith.divf %16, %17 : vector<2x64xf32>
    %19 = vector.extract_strided_slice %7 {offsets = [0, 0], sizes = [2, 64], strides = [1, 1]} : vector<16x64xf32> to vector<2x64xf32>
    %20 = arith.negf %19 : vector<2x64xf32>
    %21 = math.exp %20 : vector<2x64xf32>
    %cst_10 = arith.constant 1.000000e+00 : f32
    %22 = vector.broadcast %cst_10 : f32 to vector<2x64xf32>
    %23 = arith.addf %22, %21 : vector<2x64xf32>
    %24 = arith.divf %22, %23 : vector<2x64xf32>
    %25 = vector.extract_strided_slice %8 {offsets = [0, 0], sizes = [2, 64], strides = [1, 1]} : vector<16x64xf32> to vector<2x64xf32>
    %26 = arith.mulf %18, %12 : vector<2x64xf32>
    %27 = arith.addf %25, %26 : vector<2x64xf32>
    %28 = math.tanh %27 : vector<2x64xf32>
    %cst_11 = arith.constant 1.000000e+00 : f32
    %29 = vector.broadcast %cst_11 : f32 to vector<2x64xf32>
    %30 = arith.subf %29, %24 : vector<2x64xf32>
    %31 = arith.mulf %30, %28 : vector<2x64xf32>
    %32 = arith.truncf %31 : vector<2x64xf32> to vector<2x64xbf16>
    %cst_12 = arith.constant dense<0.000000e+00> : vector<2x192xf32>
    %33 = tpu.matmul %32, %9, %cst_12 {dimension_numbers = #tpu.dot_dimension_numbers<[1], [0], [0], [1], [0, 0, 1, 1], [], []>} : vector<2x64xbf16>, vector<64x192xbf16>, vector<2x192xf32> -> vector<2x192xf32>
    %34 = vector.extract_strided_slice %6 {offsets = [2, 0], sizes = [2, 64], strides = [1, 1]} : vector<16x64xf32> to vector<2x64xf32>
    %35 = vector.extract_strided_slice %33 {offsets = [0, 0], sizes = [2, 64], strides = [1, 1]} : vector<2x192xf32> to vector<2x64xf32>
    %36 = arith.addf %34, %35 : vector<2x64xf32>
    %37 = arith.negf %36 : vector<2x64xf32>
    %38 = math.exp %37 : vector<2x64xf32>
    %cst_13 = arith.constant 1.000000e+00 : f32
    %39 = vector.broadcast %cst_13 : f32 to vector<2x64xf32>
    %40 = arith.addf %39, %38 : vector<2x64xf32>
    %41 = arith.divf %39, %40 : vector<2x64xf32>
    %42 = vector.extract_strided_slice %7 {offsets = [2, 0], sizes = [2, 64], strides = [1, 1]} : vector<16x64xf32> to vector<2x64xf32>
    %43 = vector.extract_strided_slice %33 {offsets = [0, 64], sizes = [2, 64], strides = [1, 1]} : vector<2x192xf32> to vector<2x64xf32>
    %44 = arith.addf %42, %43 : vector<2x64xf32>
    %45 = arith.negf %44 : vector<2x64xf32>
    %46 = math.exp %45 : vector<2x64xf32>
    %cst_14 = arith.constant 1.000000e+00 : f32
    %47 = vector.broadcast %cst_14 : f32 to vector<2x64xf32>
    %48 = arith.addf %47, %46 : vector<2x64xf32>
    %49 = arith.divf %47, %48 : vector<2x64xf32>
    %50 = vector.extract_strided_slice %8 {offsets = [2, 0], sizes = [2, 64], strides = [1, 1]} : vector<16x64xf32> to vector<2x64xf32>
    %51 = vector.extract_strided_slice %33 {offsets = [0, 128], sizes = [2, 64], strides = [1, 1]} : vector<2x192xf32> to vector<2x64xf32>
    %52 = arith.addf %51, %12 : vector<2x64xf32>
    %53 = arith.mulf %41, %52 : vector<2x64xf32>
    %54 = arith.addf %50, %53 : vector<2x64xf32>
    %55 = math.tanh %54 : vector<2x64xf32>
    %cst_15 = arith.constant 1.000000e+00 : f32
    %56 = vector.broadcast %cst_15 : f32 to vector<2x64xf32>
    %57 = arith.subf %56, %49 : vector<2x64xf32>
    %58 = arith.mulf %57, %55 : vector<2x64xf32>
    %59 = arith.mulf %49, %31 : vector<2x64xf32>
    %60 = arith.addf %58, %59 : vector<2x64xf32>
    %61 = arith.truncf %60 : vector<2x64xf32> to vector<2x64xbf16>
    %cst_16 = arith.constant dense<0.000000e+00> : vector<2x192xf32>
    %62 = tpu.matmul %61, %9, %cst_16 {dimension_numbers = #tpu.dot_dimension_numbers<[1], [0], [0], [1], [0, 0, 1, 1], [], []>} : vector<2x64xbf16>, vector<64x192xbf16>, vector<2x192xf32> -> vector<2x192xf32>
    %63 = vector.extract_strided_slice %6 {offsets = [4, 0], sizes = [2, 64], strides = [1, 1]} : vector<16x64xf32> to vector<2x64xf32>
    %64 = vector.extract_strided_slice %62 {offsets = [0, 0], sizes = [2, 64], strides = [1, 1]} : vector<2x192xf32> to vector<2x64xf32>
    %65 = arith.addf %63, %64 : vector<2x64xf32>
    %66 = arith.negf %65 : vector<2x64xf32>
    %67 = math.exp %66 : vector<2x64xf32>
    %cst_17 = arith.constant 1.000000e+00 : f32
    %68 = vector.broadcast %cst_17 : f32 to vector<2x64xf32>
    %69 = arith.addf %68, %67 : vector<2x64xf32>
    %70 = arith.divf %68, %69 : vector<2x64xf32>
    %71 = vector.extract_strided_slice %7 {offsets = [4, 0], sizes = [2, 64], strides = [1, 1]} : vector<16x64xf32> to vector<2x64xf32>
    %72 = vector.extract_strided_slice %62 {offsets = [0, 64], sizes = [2, 64], strides = [1, 1]} : vector<2x192xf32> to vector<2x64xf32>
    %73 = arith.addf %71, %72 : vector<2x64xf32>
    %74 = arith.negf %73 : vector<2x64xf32>
    %75 = math.exp %74 : vector<2x64xf32>
    %cst_18 = arith.constant 1.000000e+00 : f32
    %76 = vector.broadcast %cst_18 : f32 to vector<2x64xf32>
    %77 = arith.addf %76, %75 : vector<2x64xf32>
    %78 = arith.divf %76, %77 : vector<2x64xf32>
    %79 = vector.extract_strided_slice %8 {offsets = [4, 0], sizes = [2, 64], strides = [1, 1]} : vector<16x64xf32> to vector<2x64xf32>
    %80 = vector.extract_strided_slice %62 {offsets = [0, 128], sizes = [2, 64], strides = [1, 1]} : vector<2x192xf32> to vector<2x64xf32>
    %81 = arith.addf %80, %12 : vector<2x64xf32>
    %82 = arith.mulf %70, %81 : vector<2x64xf32>
    %83 = arith.addf %79, %82 : vector<2x64xf32>
    %84 = math.tanh %83 : vector<2x64xf32>
    %cst_19 = arith.constant 1.000000e+00 : f32
    %85 = vector.broadcast %cst_19 : f32 to vector<2x64xf32>
    %86 = arith.subf %85, %78 : vector<2x64xf32>
    %87 = arith.mulf %86, %84 : vector<2x64xf32>
    %88 = arith.mulf %78, %60 : vector<2x64xf32>
    %89 = arith.addf %87, %88 : vector<2x64xf32>
    %90 = arith.truncf %89 : vector<2x64xf32> to vector<2x64xbf16>
    %cst_20 = arith.constant dense<0.000000e+00> : vector<2x192xf32>
    %91 = tpu.matmul %90, %9, %cst_20 {dimension_numbers = #tpu.dot_dimension_numbers<[1], [0], [0], [1], [0, 0, 1, 1], [], []>} : vector<2x64xbf16>, vector<64x192xbf16>, vector<2x192xf32> -> vector<2x192xf32>
    %92 = vector.extract_strided_slice %6 {offsets = [6, 0], sizes = [2, 64], strides = [1, 1]} : vector<16x64xf32> to vector<2x64xf32>
    %93 = vector.extract_strided_slice %91 {offsets = [0, 0], sizes = [2, 64], strides = [1, 1]} : vector<2x192xf32> to vector<2x64xf32>
    %94 = arith.addf %92, %93 : vector<2x64xf32>
    %95 = arith.negf %94 : vector<2x64xf32>
    %96 = math.exp %95 : vector<2x64xf32>
    %cst_21 = arith.constant 1.000000e+00 : f32
    %97 = vector.broadcast %cst_21 : f32 to vector<2x64xf32>
    %98 = arith.addf %97, %96 : vector<2x64xf32>
    %99 = arith.divf %97, %98 : vector<2x64xf32>
    %100 = vector.extract_strided_slice %7 {offsets = [6, 0], sizes = [2, 64], strides = [1, 1]} : vector<16x64xf32> to vector<2x64xf32>
    %101 = vector.extract_strided_slice %91 {offsets = [0, 64], sizes = [2, 64], strides = [1, 1]} : vector<2x192xf32> to vector<2x64xf32>
    %102 = arith.addf %100, %101 : vector<2x64xf32>
    %103 = arith.negf %102 : vector<2x64xf32>
    %104 = math.exp %103 : vector<2x64xf32>
    %cst_22 = arith.constant 1.000000e+00 : f32
    %105 = vector.broadcast %cst_22 : f32 to vector<2x64xf32>
    %106 = arith.addf %105, %104 : vector<2x64xf32>
    %107 = arith.divf %105, %106 : vector<2x64xf32>
    %108 = vector.extract_strided_slice %8 {offsets = [6, 0], sizes = [2, 64], strides = [1, 1]} : vector<16x64xf32> to vector<2x64xf32>
    %109 = vector.extract_strided_slice %91 {offsets = [0, 128], sizes = [2, 64], strides = [1, 1]} : vector<2x192xf32> to vector<2x64xf32>
    %110 = arith.addf %109, %12 : vector<2x64xf32>
    %111 = arith.mulf %99, %110 : vector<2x64xf32>
    %112 = arith.addf %108, %111 : vector<2x64xf32>
    %113 = math.tanh %112 : vector<2x64xf32>
    %cst_23 = arith.constant 1.000000e+00 : f32
    %114 = vector.broadcast %cst_23 : f32 to vector<2x64xf32>
    %115 = arith.subf %114, %107 : vector<2x64xf32>
    %116 = arith.mulf %115, %113 : vector<2x64xf32>
    %117 = arith.mulf %107, %89 : vector<2x64xf32>
    %118 = arith.addf %116, %117 : vector<2x64xf32>
    %119 = arith.truncf %118 : vector<2x64xf32> to vector<2x64xbf16>
    %cst_24 = arith.constant dense<0.000000e+00> : vector<2x192xf32>
    %120 = tpu.matmul %119, %9, %cst_24 {dimension_numbers = #tpu.dot_dimension_numbers<[1], [0], [0], [1], [0, 0, 1, 1], [], []>} : vector<2x64xbf16>, vector<64x192xbf16>, vector<2x192xf32> -> vector<2x192xf32>
    %121 = vector.extract_strided_slice %6 {offsets = [8, 0], sizes = [2, 64], strides = [1, 1]} : vector<16x64xf32> to vector<2x64xf32>
    %122 = vector.extract_strided_slice %120 {offsets = [0, 0], sizes = [2, 64], strides = [1, 1]} : vector<2x192xf32> to vector<2x64xf32>
    %123 = arith.addf %121, %122 : vector<2x64xf32>
    %124 = arith.negf %123 : vector<2x64xf32>
    %125 = math.exp %124 : vector<2x64xf32>
    %cst_25 = arith.constant 1.000000e+00 : f32
    %126 = vector.broadcast %cst_25 : f32 to vector<2x64xf32>
    %127 = arith.addf %126, %125 : vector<2x64xf32>
    %128 = arith.divf %126, %127 : vector<2x64xf32>
    %129 = vector.extract_strided_slice %7 {offsets = [8, 0], sizes = [2, 64], strides = [1, 1]} : vector<16x64xf32> to vector<2x64xf32>
    %130 = vector.extract_strided_slice %120 {offsets = [0, 64], sizes = [2, 64], strides = [1, 1]} : vector<2x192xf32> to vector<2x64xf32>
    %131 = arith.addf %129, %130 : vector<2x64xf32>
    %132 = arith.negf %131 : vector<2x64xf32>
    %133 = math.exp %132 : vector<2x64xf32>
    %cst_26 = arith.constant 1.000000e+00 : f32
    %134 = vector.broadcast %cst_26 : f32 to vector<2x64xf32>
    %135 = arith.addf %134, %133 : vector<2x64xf32>
    %136 = arith.divf %134, %135 : vector<2x64xf32>
    %137 = vector.extract_strided_slice %8 {offsets = [8, 0], sizes = [2, 64], strides = [1, 1]} : vector<16x64xf32> to vector<2x64xf32>
    %138 = vector.extract_strided_slice %120 {offsets = [0, 128], sizes = [2, 64], strides = [1, 1]} : vector<2x192xf32> to vector<2x64xf32>
    %139 = arith.addf %138, %12 : vector<2x64xf32>
    %140 = arith.mulf %128, %139 : vector<2x64xf32>
    %141 = arith.addf %137, %140 : vector<2x64xf32>
    %142 = math.tanh %141 : vector<2x64xf32>
    %cst_27 = arith.constant 1.000000e+00 : f32
    %143 = vector.broadcast %cst_27 : f32 to vector<2x64xf32>
    %144 = arith.subf %143, %136 : vector<2x64xf32>
    %145 = arith.mulf %144, %142 : vector<2x64xf32>
    %146 = arith.mulf %136, %118 : vector<2x64xf32>
    %147 = arith.addf %145, %146 : vector<2x64xf32>
    %148 = vector.extract_strided_slice %147 {offsets = [0, 0], sizes = [2, 32], strides = [1, 1]} : vector<2x64xf32> to vector<2x32xf32>
    %149 = vector.extract_strided_slice %118 {offsets = [0, 32], sizes = [2, 32], strides = [1, 1]} : vector<2x64xf32> to vector<2x32xf32>
    %150 = arith.addf %148, %149 : vector<2x32xf32>
    %c0_28 = arith.constant 0 : index
    %c128 = arith.constant 128 : index
    %151 = vector.load %arg6[%c0_28, %c128] : memref<2x256xf32, #tpu.memory_space<vmem>>, vector<2x32xf32>
    tpu.vector_store %arg6[%c0_28, %c128], %150 {strides = array<i32>} : memref<2x256xf32, #tpu.memory_space<vmem>>, vector<2x32xf32>,
    %152 = vector.extract_strided_slice %118 {offsets = [0, 0], sizes = [2, 32], strides = [1, 1]} : vector<2x64xf32> to vector<2x32xf32>
    %153 = vector.extract_strided_slice %147 {offsets = [0, 32], sizes = [2, 32], strides = [1, 1]} : vector<2x64xf32> to vector<2x32xf32>
    %154 = arith.addf %152, %153 : vector<2x32xf32>
    %c0_29 = arith.constant 0 : index
    %c96 = arith.constant 96 : index
    %155 = vector.load %arg6[%c0_29, %c96] : memref<2x256xf32, #tpu.memory_space<vmem>>, vector<2x32xf32>
    tpu.vector_store %arg6[%c0_29, %c96], %154 {strides = array<i32>} : memref<2x256xf32, #tpu.memory_space<vmem>>, vector<2x32xf32>,
    %156 = arith.truncf %147 : vector<2x64xf32> to vector<2x64xbf16>
    %cst_30 = arith.constant dense<0.000000e+00> : vector<2x192xf32>
    %157 = tpu.matmul %156, %9, %cst_30 {dimension_numbers = #tpu.dot_dimension_numbers<[1], [0], [0], [1], [0, 0, 1, 1], [], []>} : vector<2x64xbf16>, vector<64x192xbf16>, vector<2x192xf32> -> vector<2x192xf32>
    %158 = vector.extract_strided_slice %6 {offsets = [10, 0], sizes = [2, 64], strides = [1, 1]} : vector<16x64xf32> to vector<2x64xf32>
    %159 = vector.extract_strided_slice %157 {offsets = [0, 0], sizes = [2, 64], strides = [1, 1]} : vector<2x192xf32> to vector<2x64xf32>
    %160 = arith.addf %158, %159 : vector<2x64xf32>
    %161 = arith.negf %160 : vector<2x64xf32>
    %162 = math.exp %161 : vector<2x64xf32>
    %cst_31 = arith.constant 1.000000e+00 : f32
    %163 = vector.broadcast %cst_31 : f32 to vector<2x64xf32>
    %164 = arith.addf %163, %162 : vector<2x64xf32>
    %165 = arith.divf %163, %164 : vector<2x64xf32>
    %166 = vector.extract_strided_slice %7 {offsets = [10, 0], sizes = [2, 64], strides = [1, 1]} : vector<16x64xf32> to vector<2x64xf32>
    %167 = vector.extract_strided_slice %157 {offsets = [0, 64], sizes = [2, 64], strides = [1, 1]} : vector<2x192xf32> to vector<2x64xf32>
    %168 = arith.addf %166, %167 : vector<2x64xf32>
    %169 = arith.negf %168 : vector<2x64xf32>
    %170 = math.exp %169 : vector<2x64xf32>
    %cst_32 = arith.constant 1.000000e+00 : f32
    %171 = vector.broadcast %cst_32 : f32 to vector<2x64xf32>
    %172 = arith.addf %171, %170 : vector<2x64xf32>
    %173 = arith.divf %171, %172 : vector<2x64xf32>
    %174 = vector.extract_strided_slice %8 {offsets = [10, 0], sizes = [2, 64], strides = [1, 1]} : vector<16x64xf32> to vector<2x64xf32>
    %175 = vector.extract_strided_slice %157 {offsets = [0, 128], sizes = [2, 64], strides = [1, 1]} : vector<2x192xf32> to vector<2x64xf32>
    %176 = arith.addf %175, %12 : vector<2x64xf32>
    %177 = arith.mulf %165, %176 : vector<2x64xf32>
    %178 = arith.addf %174, %177 : vector<2x64xf32>
    %179 = math.tanh %178 : vector<2x64xf32>
    %cst_33 = arith.constant 1.000000e+00 : f32
    %180 = vector.broadcast %cst_33 : f32 to vector<2x64xf32>
    %181 = arith.subf %180, %173 : vector<2x64xf32>
    %182 = arith.mulf %181, %179 : vector<2x64xf32>
    %183 = arith.mulf %173, %147 : vector<2x64xf32>
    %184 = arith.addf %182, %183 : vector<2x64xf32>
    %185 = vector.extract_strided_slice %184 {offsets = [0, 0], sizes = [2, 32], strides = [1, 1]} : vector<2x64xf32> to vector<2x32xf32>
    %186 = vector.extract_strided_slice %89 {offsets = [0, 32], sizes = [2, 32], strides = [1, 1]} : vector<2x64xf32> to vector<2x32xf32>
    %187 = arith.addf %185, %186 : vector<2x32xf32>
    %c0_34 = arith.constant 0 : index
    %c160 = arith.constant 160 : index
    %188 = vector.load %arg6[%c0_34, %c160] : memref<2x256xf32, #tpu.memory_space<vmem>>, vector<2x32xf32>
    tpu.vector_store %arg6[%c0_34, %c160], %187 {strides = array<i32>} : memref<2x256xf32, #tpu.memory_space<vmem>>, vector<2x32xf32>,
    %189 = vector.extract_strided_slice %89 {offsets = [0, 0], sizes = [2, 32], strides = [1, 1]} : vector<2x64xf32> to vector<2x32xf32>
    %190 = vector.extract_strided_slice %184 {offsets = [0, 32], sizes = [2, 32], strides = [1, 1]} : vector<2x64xf32> to vector<2x32xf32>
    %191 = arith.addf %189, %190 : vector<2x32xf32>
    %c0_35 = arith.constant 0 : index
    %c64 = arith.constant 64 : index
    %192 = vector.load %arg6[%c0_35, %c64] : memref<2x256xf32, #tpu.memory_space<vmem>>, vector<2x32xf32>
    tpu.vector_store %arg6[%c0_35, %c64], %191 {strides = array<i32>} : memref<2x256xf32, #tpu.memory_space<vmem>>, vector<2x32xf32>,
    %193 = arith.truncf %184 : vector<2x64xf32> to vector<2x64xbf16>
    %cst_36 = arith.constant dense<0.000000e+00> : vector<2x192xf32>
    %194 = tpu.matmul %193, %9, %cst_36 {dimension_numbers = #tpu.dot_dimension_numbers<[1], [0], [0], [1], [0, 0, 1, 1], [], []>} : vector<2x64xbf16>, vector<64x192xbf16>, vector<2x192xf32> -> vector<2x192xf32>
    %195 = vector.extract_strided_slice %6 {offsets = [12, 0], sizes = [2, 64], strides = [1, 1]} : vector<16x64xf32> to vector<2x64xf32>
    %196 = vector.extract_strided_slice %194 {offsets = [0, 0], sizes = [2, 64], strides = [1, 1]} : vector<2x192xf32> to vector<2x64xf32>
    %197 = arith.addf %195, %196 : vector<2x64xf32>
    %198 = arith.negf %197 : vector<2x64xf32>
    %199 = math.exp %198 : vector<2x64xf32>
    %cst_37 = arith.constant 1.000000e+00 : f32
    %200 = vector.broadcast %cst_37 : f32 to vector<2x64xf32>
    %201 = arith.addf %200, %199 : vector<2x64xf32>
    %202 = arith.divf %200, %201 : vector<2x64xf32>
    %203 = vector.extract_strided_slice %7 {offsets = [12, 0], sizes = [2, 64], strides = [1, 1]} : vector<16x64xf32> to vector<2x64xf32>
    %204 = vector.extract_strided_slice %194 {offsets = [0, 64], sizes = [2, 64], strides = [1, 1]} : vector<2x192xf32> to vector<2x64xf32>
    %205 = arith.addf %203, %204 : vector<2x64xf32>
    %206 = arith.negf %205 : vector<2x64xf32>
    %207 = math.exp %206 : vector<2x64xf32>
    %cst_38 = arith.constant 1.000000e+00 : f32
    %208 = vector.broadcast %cst_38 : f32 to vector<2x64xf32>
    %209 = arith.addf %208, %207 : vector<2x64xf32>
    %210 = arith.divf %208, %209 : vector<2x64xf32>
    %211 = vector.extract_strided_slice %8 {offsets = [12, 0], sizes = [2, 64], strides = [1, 1]} : vector<16x64xf32> to vector<2x64xf32>
    %212 = vector.extract_strided_slice %194 {offsets = [0, 128], sizes = [2, 64], strides = [1, 1]} : vector<2x192xf32> to vector<2x64xf32>
    %213 = arith.addf %212, %12 : vector<2x64xf32>
    %214 = arith.mulf %202, %213 : vector<2x64xf32>
    %215 = arith.addf %211, %214 : vector<2x64xf32>
    %216 = math.tanh %215 : vector<2x64xf32>
    %cst_39 = arith.constant 1.000000e+00 : f32
    %217 = vector.broadcast %cst_39 : f32 to vector<2x64xf32>
    %218 = arith.subf %217, %210 : vector<2x64xf32>
    %219 = arith.mulf %218, %216 : vector<2x64xf32>
    %220 = arith.mulf %210, %184 : vector<2x64xf32>
    %221 = arith.addf %219, %220 : vector<2x64xf32>
    %222 = vector.extract_strided_slice %221 {offsets = [0, 0], sizes = [2, 32], strides = [1, 1]} : vector<2x64xf32> to vector<2x32xf32>
    %223 = vector.extract_strided_slice %60 {offsets = [0, 32], sizes = [2, 32], strides = [1, 1]} : vector<2x64xf32> to vector<2x32xf32>
    %224 = arith.addf %222, %223 : vector<2x32xf32>
    %c0_40 = arith.constant 0 : index
    %c192 = arith.constant 192 : index
    %225 = vector.load %arg6[%c0_40, %c192] : memref<2x256xf32, #tpu.memory_space<vmem>>, vector<2x32xf32>
    tpu.vector_store %arg6[%c0_40, %c192], %224 {strides = array<i32>} : memref<2x256xf32, #tpu.memory_space<vmem>>, vector<2x32xf32>,
    %226 = vector.extract_strided_slice %60 {offsets = [0, 0], sizes = [2, 32], strides = [1, 1]} : vector<2x64xf32> to vector<2x32xf32>
    %227 = vector.extract_strided_slice %221 {offsets = [0, 32], sizes = [2, 32], strides = [1, 1]} : vector<2x64xf32> to vector<2x32xf32>
    %228 = arith.addf %226, %227 : vector<2x32xf32>
    %c0_41 = arith.constant 0 : index
    %c32 = arith.constant 32 : index
    %229 = vector.load %arg6[%c0_41, %c32] : memref<2x256xf32, #tpu.memory_space<vmem>>, vector<2x32xf32>
    tpu.vector_store %arg6[%c0_41, %c32], %228 {strides = array<i32>} : memref<2x256xf32, #tpu.memory_space<vmem>>, vector<2x32xf32>,
    %230 = arith.truncf %221 : vector<2x64xf32> to vector<2x64xbf16>
    %cst_42 = arith.constant dense<0.000000e+00> : vector<2x192xf32>
    %231 = tpu.matmul %230, %9, %cst_42 {dimension_numbers = #tpu.dot_dimension_numbers<[1], [0], [0], [1], [0, 0, 1, 1], [], []>} : vector<2x64xbf16>, vector<64x192xbf16>, vector<2x192xf32> -> vector<2x192xf32>
    %232 = vector.extract_strided_slice %6 {offsets = [14, 0], sizes = [2, 64], strides = [1, 1]} : vector<16x64xf32> to vector<2x64xf32>
    %233 = vector.extract_strided_slice %231 {offsets = [0, 0], sizes = [2, 64], strides = [1, 1]} : vector<2x192xf32> to vector<2x64xf32>
    %234 = arith.addf %232, %233 : vector<2x64xf32>
    %235 = arith.negf %234 : vector<2x64xf32>
    %236 = math.exp %235 : vector<2x64xf32>
    %cst_43 = arith.constant 1.000000e+00 : f32
    %237 = vector.broadcast %cst_43 : f32 to vector<2x64xf32>
    %238 = arith.addf %237, %236 : vector<2x64xf32>
    %239 = arith.divf %237, %238 : vector<2x64xf32>
    %240 = vector.extract_strided_slice %7 {offsets = [14, 0], sizes = [2, 64], strides = [1, 1]} : vector<16x64xf32> to vector<2x64xf32>
    %241 = vector.extract_strided_slice %231 {offsets = [0, 64], sizes = [2, 64], strides = [1, 1]} : vector<2x192xf32> to vector<2x64xf32>
    %242 = arith.addf %240, %241 : vector<2x64xf32>
    %243 = arith.negf %242 : vector<2x64xf32>
    %244 = math.exp %243 : vector<2x64xf32>
    %cst_44 = arith.constant 1.000000e+00 : f32
    %245 = vector.broadcast %cst_44 : f32 to vector<2x64xf32>
    %246 = arith.addf %245, %244 : vector<2x64xf32>
    %247 = arith.divf %245, %246 : vector<2x64xf32>
    %248 = vector.extract_strided_slice %8 {offsets = [14, 0], sizes = [2, 64], strides = [1, 1]} : vector<16x64xf32> to vector<2x64xf32>
    %249 = vector.extract_strided_slice %231 {offsets = [0, 128], sizes = [2, 64], strides = [1, 1]} : vector<2x192xf32> to vector<2x64xf32>
    %250 = arith.addf %249, %12 : vector<2x64xf32>
    %251 = arith.mulf %239, %250 : vector<2x64xf32>
    %252 = arith.addf %248, %251 : vector<2x64xf32>
    %253 = math.tanh %252 : vector<2x64xf32>
    %cst_45 = arith.constant 1.000000e+00 : f32
    %254 = vector.broadcast %cst_45 : f32 to vector<2x64xf32>
    %255 = arith.subf %254, %247 : vector<2x64xf32>
    %256 = arith.mulf %255, %253 : vector<2x64xf32>
    %257 = arith.mulf %247, %221 : vector<2x64xf32>
    %258 = arith.addf %256, %257 : vector<2x64xf32>
    %259 = vector.extract_strided_slice %258 {offsets = [0, 0], sizes = [2, 32], strides = [1, 1]} : vector<2x64xf32> to vector<2x32xf32>
    %260 = vector.extract_strided_slice %31 {offsets = [0, 32], sizes = [2, 32], strides = [1, 1]} : vector<2x64xf32> to vector<2x32xf32>
    %261 = arith.addf %259, %260 : vector<2x32xf32>
    %c0_46 = arith.constant 0 : index
    %c224 = arith.constant 224 : index
    %262 = vector.load %arg6[%c0_46, %c224] : memref<2x256xf32, #tpu.memory_space<vmem>>, vector<2x32xf32>
    tpu.vector_store %arg6[%c0_46, %c224], %261 {strides = array<i32>} : memref<2x256xf32, #tpu.memory_space<vmem>>, vector<2x32xf32>,
    %263 = vector.extract_strided_slice %31 {offsets = [0, 0], sizes = [2, 32], strides = [1, 1]} : vector<2x64xf32> to vector<2x32xf32>
    %264 = vector.extract_strided_slice %258 {offsets = [0, 32], sizes = [2, 32], strides = [1, 1]} : vector<2x64xf32> to vector<2x32xf32>
    %265 = arith.addf %263, %264 : vector<2x32xf32>
    %c0_47 = arith.constant 0 : index
    %c0_48 = arith.constant 0 : index
    %266 = vector.load %arg6[%c0_47, %c0_48] : memref<2x256xf32, #tpu.memory_space<vmem>>, vector<2x32xf32>
    tpu.vector_store %arg6[%c0_47, %c0_48], %265 {strides = array<i32>} : memref<2x256xf32, #tpu.memory_space<vmem>>, vector<2x32xf32>,
    return
  }
  func.func @transform_0(%arg0: i32) -> (i32, i32) {
    %c0_i32 = arith.constant 0 : i32
    %c0_i32_0 = arith.constant 0 : i32
    %c0_i32_1 = arith.constant 0 : i32
    return %c0_i32, %c0_i32_0 : i32, i32
  }
  func.func @transform_1(%arg0: i32) -> (i32, i32) {
    %c0_i32 = arith.constant 0 : i32
    %c0_i32_0 = arith.constant 0 : i32
    %c0_i32_1 = arith.constant 0 : i32
    return %c0_i32, %c0_i32_0 : i32, i32
  }
  func.func @transform_2(%arg0: i32) -> (i32, i32) {
    %c0_i32 = arith.constant 0 : i32
    %c0_i32_0 = arith.constant 0 : i32
    %c0_i32_1 = arith.constant 0 : i32
    return %c0_i32, %c0_i32_0 : i32, i32
  }
  func.func @transform_3(%arg0: i32) -> (i32, i32) {
    %c0_i32 = arith.constant 0 : i32
    %c0_i32_0 = arith.constant 0 : i32
    %c0_i32_1 = arith.constant 0 : i32
    return %c0_i32, %c0_i32_0 : i32, i32
  }
  func.func @transform_4(%arg0: i32) -> (i32, i32) {
    %c0_i32 = arith.constant 0 : i32
    %c0_i32_0 = arith.constant 0 : i32
    %c0_i32_1 = arith.constant 0 : i32
    return %c0_i32, %c0_i32_0 : i32, i32
  }
  func.func @transform_5(%arg0: i32) -> (i32, i32) {
    %c0_i32 = arith.constant 0 : i32
    %c0_i32_0 = arith.constant 0 : i32
    %c0_i32_1 = arith.constant 0 : i32
    return %c0_i32, %c0_i32_0 : i32, i32
  }
}

</mosaic_0001>

<bundles_post_ra>
// kernel: tpu_custom_call.1
= control target key start
LH: loop header
LB: loop body
LE: loop exit
PB: predicated region body
PF: predicated region fallthrough
CT: control target
= control target key end

     0   :  { %10 = vsyncpa [#allocation3], 0  ;;  %s1470_s0 = inlined_call_operand.hbm [shape: f32[16,64], index: 0, kind: input, shape index: {}]   ;;  %s1471_s1 = inlined_call_operand.hbm [shape: f32[64,192], index: 1, kind: input, shape index: {}]   ;;  %s1472_s2 = inlined_call_operand.hbm [shape: bf16[64,192], index: 2, kind: input, shape index: {}]   ;;  %s1473_s3 = inlined_call_operand.vmem [shape: f32[1,192], index: 3, kind: input, shape index: {}]   ;;  %s1474_s4 = inlined_call_operand.vmem [shape: f32[1,64], index: 4, kind: input, shape index: {}]   ;;  %s1475_s5 = inlined_call_operand.hbm [shape: f32[2,256], index: 5, kind: output, shape index: {}]  }
   0x1   :  { %11 = vsyncpa [#allocation6], 0 }
   0x2   :  { %12 = vsyncpa [#allocation4], 0  ;;  %s1146_s18 = smov [#allocation5]   ;;  %s1052_s22 = scalar_lea.hbm %s1471_s1, 2048 }
   0x3   :  { %s30_s19 = sshll.u32 %s1146_s18, 4  ;;  %p1053_p0 = scmp.ne.s32.totalorder %s1471_s1, %s1052_s22  ;;  %s31_s19 = int_to_ptr.vmem [resolvable:$true] %s30_s19 }
   0x4   :  { %p1056_p1 = scmp.lt.u32.totalorder %s1052_s22, %s1471_s1 }
   0x6   :  { %p1058_p2 = pnand %p1056_p1, %p1053_p0 }
   0x8   :  { %1061 = shalt.err (!%p1058_p2)
}
   0x9   :  { %s1062_s27 = scalar_lea.vmem %s31_s19, 2048  ;;  %p1067_p4 = scmp.lt.s32.totalorder %s31_s19, %s31_s19 }
   0xa   :  { %p1063_p3 = scmp.ne.s32.totalorder %s31_s19, %s1062_s27  ;;  %p1068_p5 = scmp.lt.s32.totalorder %s1062_s27, %s1062_s27 }
   0xc   :  { %p1069_p6 = por %p1068_p5, %p1067_p4 }
   0xe   :  { %p1070_p7 = pnand %p1069_p6, %p1063_p3 }
  0x10   :  { %1073 = shalt.err (!%p1070_p7)
}
  0x11   :  { %s1147_s28 = smov 256   ;;  %s1148_s29 = smov 16  }
  0x12   :  { %36 = dma.hbm_to_vmem [thread:$0]  %s1471_s1, 2048, %s31_s19, [#allocation6], %s1147_s28, %s1147_s28, %s1148_s29  }
  0x13   :  { %s1149_s7 = smov [#allocation2]   ;;  %s1074_s11 = scalar_lea.hbm %s1470_s0, 256 }
  0x14   :  { %s18_s8 = sshll.u32 %s1149_s7, 4  ;;  %p1075_p8 = scmp.ne.s32.totalorder %s1470_s0, %s1074_s11  ;;  %s19_s8 = int_to_ptr.vmem [resolvable:$true] %s18_s8 }
  0x15   :  { %p1078_p9 = scmp.lt.u32.totalorder %s1074_s11, %s1470_s0 }
  0x17   :  { %p1080_p10 = pnand %p1078_p9, %p1075_p8 }
  0x19   :  { %1083 = shalt.err (!%p1080_p10)
}
  0x1a   :  { %s1084_s16 = scalar_lea.vmem %s19_s8, 256  ;;  %p1089_p12 = scmp.lt.s32.totalorder %s19_s8, %s19_s8 }
  0x1b   :  { %p1085_p11 = scmp.ne.s32.totalorder %s19_s8, %s1084_s16  ;;  %p1090_p13 = scmp.lt.s32.totalorder %s1084_s16, %s1084_s16 }
  0x1d   :  { %p1091_p0 = por %p1090_p13, %p1089_p12 }
  0x1f   :  { %p1092_p1 = pnand %p1091_p0, %p1085_p11 }
  0x21   :  { %1095 = shalt.err (!%p1092_p1)
}
  0x22   :  { %s1150_s1 = smov 128   ;;  %s1151_s17 = smov 8  }
  0x23   :  { %24 = dma.hbm_to_vmem [thread:$0]  %s1470_s0, 256, %s19_s8, [#allocation3], %s1150_s1, %s1150_s1, %s1151_s17  }
  0x24   :  { %s1152_s20 = smov [#allocation7]   ;;  %s1096_s24 = scalar_lea.hbm %s1472_s2, 1024 }
  0x25   :  { %s42_s21 = sshll.u32 %s1152_s20, 4  ;;  %p1097_p2 = scmp.ne.s32.totalorder %s1472_s2, %s1096_s24  ;;  %s43_s21 = int_to_ptr.vmem [resolvable:$true] %s42_s21 }
  0x26   :  { %p1100_p3 = scmp.lt.u32.totalorder %s1096_s24, %s1472_s2 }
  0x28   :  { %p1102_p4 = pnand %p1100_p3, %p1097_p2 }
  0x2a   :  { %1105 = shalt.err (!%p1102_p4)
}
  0x2b   :  { %s1106_s29 = scalar_lea.vmem %s43_s21, 1024  ;;  %p1111_p6 = scmp.lt.s32.totalorder %s43_s21, %s43_s21 }
  0x2c   :  { %p1107_p5 = scmp.ne.s32.totalorder %s43_s21, %s1106_s29  ;;  %p1112_p7 = scmp.lt.s32.totalorder %s1106_s29, %s1106_s29 }
  0x2e   :  { %p1113_p8 = por %p1112_p7, %p1111_p6 }
  0x30   :  { %p1114_p9 = pnand %p1113_p8, %p1107_p5 }
  0x32   :  { %1117 = shalt.err (!%p1114_p9)
}
  0x33   :  { %48 = dma.hbm_to_vmem [thread:$0]  %s1472_s2, 1024, %s43_s21, [#allocation6], %s1150_s1, %s1150_s1, %s1151_s17  }
  0x34   :  { %1140 = dma.done.wait [#allocation3], 256  }
  0x35   :  { %1141 = vsyncadd [#allocation3], 4294967040 }
  0x36   :  { %1142 = dma.done.wait [#allocation6], 3072  }
  0x37   :  { %1143 = vsyncadd [#allocation6], 4294964224  ;;  %v1153_v0 = vmov 0.0   ;;  %v66_v1 = vld [vmem:[#allocation5 + $0x8] sm:$0xff]  ;;  %v68_v2 = vld [vmem:[#allocation5 + $0x18] sm:$0xff]  ;;  %vm93_vm0 = vcmask 523264   ;;  %v83_v26 = vlaneseq }
  0x38   :  { %164 = vmatprep.mubr.f32.mxu0 %v1153_v0  ;;  %v65_v3 = vld [vmem:[#allocation5] sm:$0xff]  ;;  %v962_v4 = vpack.c.bf16 %v68_v2, %v66_v1  ;;  %v67_v5 = vld [vmem:[#allocation5 + $0x10] sm:$0xff]  ;;  %v70_v6 = vld [vmem:[#allocation5 + $0x28] sm:$0xff]  ;;  %v1154_v48 = vmov 0   ;;  %s1158_s9 = smov 32   ;;  %vm563_vm1 = vcmask 254976  }
  0x39   :  { %v72_v7 = vld [vmem:[#allocation5 + $0x38] sm:$0xff]  ;;  %v964_v8 = vpack.c.bf16 %v67_v5, %v65_v3  ;;  %v69_v10 = vld [vmem:[#allocation5 + $0x20] sm:$0xff]  ;;  %v71_v11 = vld [vmem:[#allocation5 + $0x30] sm:$0xff]  ;;  %v1227_v27 = vshrl.u32 %v83_v26, 7  ;;  %286 = vmatprep.mubr.bf16.mxu1 %v1154_v48  ;;  %vm584_vm2 = vcmask 1042176   ;;  %vm696_vm3 = vcmask 779776  }
  0x3a   :  { %v966_v9 = vpack.c.bf16 %v72_v7, %v70_v6  ;;  %v74_v12 = vld [vmem:[#allocation5 + $0x48] sm:$0xff]  ;;  %963 = vmatprep.subr.bf16.mxu0 %v962_v4  ;;  %v76_v13 = vld [vmem:[#allocation5 + $0x58] sm:$0xff]  ;;  %v968_v14 = vpack.c.bf16 %v71_v11, %v69_v10  ;;  %v73_v15 = vld [vmem:[#allocation5 + $0x40] sm:$0xff]  ;;  %vm678_vm4 = vcmask 517376   ;;  %s1159_s10 = smov [#allocation8]  }
  0x3b   :  { %965 = vmatpush1.bf16.msra.mxu0 %v964_v8  ;;  %v970_v16 = vpack.c.bf16 %v76_v13, %v74_v12  ;;  %v75_v17 = vld [vmem:[#allocation5 + $0x50] sm:$0xff]  ;;  %v78_v18 = vld [vmem:[#allocation5 + $0x68] sm:$0xff]  ;;  %v80_v19 = vld [vmem:[#allocation5 + $0x78] sm:$0xff]  ;;  %v85_v28 = vsub.s32 0, %v1227_v27  ;;  %v89_v37 = vsub.s32 1, %v1227_v27  ;;  %s926_s11 = sshll.u32 %s1159_s10, 4  ;;  %s927_s11 = int_to_ptr.vmem [resolvable:$true] %s926_s11 }
  0x3c   :  { %967 = vmatprep.subr.bf16.mxu0 %v966_v9  ;;  %v972_v20 = vpack.c.bf16 %v75_v17, %v73_v15  ;;  %v974_v21 = vpack.c.bf16 %v80_v19, %v78_v18  ;;  %v77_v22 = vld [vmem:[#allocation5 + $0x60] sm:$0xff]  ;;  %v79_v23 = vld [vmem:[#allocation5 + $0x70] sm:$0xff]  ;;  %v64_v9 = vld [vmem:[#allocation2 + $0x8] sm:$0xff]  ;;  %s1118_s12 = scalar_lea.vmem %s927_s11, 64  ;;  %p1123_p11 = scmp.lt.s32.totalorder %s927_s11, %s927_s11 }
  0x3d   :  { %v976_v24 = vpack.c.bf16 %v79_v23, %v77_v22  ;;  %v63_v25 = vld [vmem:[#allocation2] sm:$0xff]  ;;  %v1252_v44 = vld [vmem:[#allocation7 + $0x4] ss:$8 sps:$4 sm:$0xff]   ;;  %v1254_v45 = vld [vmem:[#allocation7] ss:$8 sps:$4 sm:$0xff]   ;;  %p1119_p10 = scmp.ne.s32.totalorder %s927_s11, %s1118_s12  ;;  %p1124_p12 = scmp.lt.s32.totalorder %s1118_s12, %s1118_s12 }
  0x3e   :  { %v81_v29 = vld [vmem:[%s1473_s3] sm:$0x3]  ;;  %v1256_v46 = vld [vmem:[#allocation7 + $0x14] ss:$8 sps:$4 sm:$0xff]   ;;  %254 = vmatprep.subr.bf16.mxu1 %v1252_v44  ;;  %v1265_v49 = vld [vmem:[#allocation7 + $0x24] ss:$8 sps:$4 sm:$0xff]  }
  0x3f   :  { %969 = vmatpush1.bf16.msra.mxu0 %v968_v14  ;;  %v1233_v30 = vrot.slane %v81_v29, %v85_v28  ;;  %v1240_v38 = vrot.slane %v81_v29, %v89_v37  ;;  %v1245_v39 = vld [vmem:[%s1474_s4] ss:$0 sm:$0xff]  ;;  %255 = vmatpush1.bf16.msra.mxu1 %v1254_v45  ;;  %v1270_v50 = vld [vmem:[#allocation7 + $0x20] ss:$8 sps:$4 sm:$0xff]   ;;  %v1273_v52 = vld [vmem:[#allocation7 + $0x34] ss:$8 sps:$4 sm:$0xff]   ;;  %p1125_p13 = por %p1124_p12, %p1123_p11 }
  0x40   :  { %971 = vmatprep.subr.bf16.mxu0 %v970_v16  ;;  %v1261_v47 = vld [vmem:[#allocation7 + $0x10] ss:$8 sps:$4 sm:$0xff]   ;;  %256 = vmatprep.subr.bf16.mxu1 %v1256_v46  ;;  %s1155_s3 = smov 64   ;;  %s1156_s4 = smov 96  }
  0x41   :  { %v1279_v53 = vld [vmem:[#allocation7 + $0x30] ss:$8 sps:$4 sm:$0xff]   ;;  %p1126_p0 = pnand %p1125_p13, %p1119_p10 }
  0x43   :  { %973 = vmatpush1.bf16.msra.mxu0 %v972_v20  ;;  %257 = vmatpush1.bf16.msra.mxu1 %v1261_v47 }
  0x44   :  { %975 = vmatprep.subr.bf16.mxu0 %v974_v21  ;;  %258 = vmatprep.subr.bf16.mxu1 %v1265_v49 }
  0x47   :  { %977 = vmatpush1.bf16.msra.mxu0 %v976_v24  ;;  %259 = vmatpush1.bf16.msra.mxu1 %v1270_v50 }
  0x48   :  { %331 = vmatprep.subr.bf16.mxu0 %v1252_v44  ;;  %260 = vmatprep.subr.bf16.mxu1 %v1273_v52 }
  0x4a   :  { %936 = vmatmul.mubr.msk.f32.vlgmr.msra.gmra.mrb[0].mxu0 %vm93_vm0, %v63_v25 }
  0x4b   :  { %170 = vmatprep.mubr.f32.mxu0 %v1153_v0  ;;  %332 = vmatpush1.bf16.msra.mxu0 %v1254_v45 }
  0x4c   :  { %333 = vmatprep.subr.bf16.mxu0 %v1256_v46  ;;  %261 = vmatpush1.bf16.msra.mxu1 %v1279_v53 }
  0x4d   :  { %408 = vmatprep.subr.bf16.mxu1 %v1252_v44 }
  0x4e   :  { %937 = vmatmul.mubr.msk.f32.gmra.mrb[2].mxu0 %vm93_vm0, %v64_v9 }
  0x4f   :  { %334 = vmatpush1.bf16.msra.mxu0 %v1261_v47  ;;  %363 = vmatprep.mubr.bf16.mxu0 %v1154_v48 }
  0x50   :  { %335 = vmatprep.subr.bf16.mxu0 %v1265_v49 }
  0x53   :  { %336 = vmatpush1.bf16.msra.mxu0 %v1270_v50 }
  0x54   :  { %337 = vmatprep.subr.bf16.mxu0 %v1273_v52 }
  0x57   :  { %338 = vmatpush1.bf16.msra.mxu0 %v1279_v53 }
  0x58   :  { %485 = vmatprep.subr.bf16.mxu0 %v1252_v44 }
 0x11d   :  { %v166_v31 = vpop.f32.mrb[0].mxu0 }
 0x11e   :  { %v1236_v32 = vadd.f32 %v166_v31, %v1233_v30  ;;  %v168_v33 = vpop.f32.mrb[1].mxu0 }
 0x11f   :  { %v1248_v41 = vadd.f32 %v168_v33, %v1240_v38 }
 0x120   :  { %v939_v34 = vmul.f32 -1.442695, %v1236_v32 }
 0x121   :  { %v1315_v19 = vpop.f32.mrb[2].mxu0 }
 0x122   :  { %1004 = vpow2.f32 %v939_v34  ;;  %v1317_v20 = vpop.f32.mrb[3].mxu0 }
 0x12c   :  { %v1005_v35 = vpop.eup %1004 }
 0x12d   :  { %v195_v36 = vadd.f32 1.0, %v1005_v35 }
 0x12f   :  { %1006 = vrcp.f32 %v195_v36 }
 0x139   :  { %v1007_v40 = vpop.eup %1006 }
 0x13a   :  { %v198_v42 = vmul.f32 %v1007_v40, %v1245_v39  ;;  %v201_v54 = vsub.f32 1.0, %v1007_v40 }
 0x13c   :  { %v199_v43 = vadd.f32 %v198_v42, %v1248_v41 }
 0x13e   :  { %1008 = vtanh.f32 %v199_v43 }
 0x148   :  { %v1009_v51 = vpop.eup %1008 }
 0x149   :  { %203 = vrot.lane.b32.xlu0 %v1009_v51, %s1155_s3 }
 0x1bb   :  { %v204_v55 = vpop.permute.xlu0 %203 }
 0x1bc   :  { %v1288_v56 = vmul.f32 %v204_v55, %v201_v54 }
 0x1be   :  { %v207_v57 = vpack.c.bf16 %v1288_v56, %v1288_v56  ;;  %v319_v12 = vrot.slane %v1288_v56, 6 }
 0x1c0   :  { %209 = vrot.lane.b32.xlu0 %v207_v57, %s1155_s3 }
 0x232   :  { %v210_v58 = vpop.permute.xlu0 %209 }
 0x233   :  { %948 = vmatmul.mubr.msk.bf16.vlgmr.msra.gmra.mrb[0].mxu1 %vm93_vm0, %v210_v58 }
 0x234   :  { %409 = vmatpush1.bf16.msra.mxu1 %v1254_v45  ;;  %440 = vmatprep.mubr.bf16.mxu1 %v1154_v48 }
 0x235   :  { %410 = vmatprep.subr.bf16.mxu1 %v1256_v46 }
 0x238   :  { %411 = vmatpush1.bf16.msra.mxu1 %v1261_v47 }
 0x239   :  { %412 = vmatprep.subr.bf16.mxu1 %v1265_v49 }
 0x23c   :  { %413 = vmatpush1.bf16.msra.mxu1 %v1270_v50 }
 0x23d   :  { %414 = vmatprep.subr.bf16.mxu1 %v1273_v52 }
 0x240   :  { %415 = vmatpush1.bf16.msra.mxu1 %v1279_v53 }
 0x241   :  { %593 = vmatprep.subr.bf16.mxu1 %v1252_v44 }
 0x306   :  { %v288_v59 = vpop.f32.mrb[0].mxu1 }
 0x307   :  { %v296_v60 = vrot.slane %v288_v59, 6  ;;  %v290_v61 = vpop.f32.mrb[1].mxu1 }
 0x308   :  { %v292_v62 = vpop.f32.mrb[2].mxu1  ;;  %v305_v4 = vadd.f32 %v1245_v39, %v290_v61 }
 0x309   :  { %v298_v63 = vadd.f32 %v296_v60, %v1236_v32  ;;  %v293_v0 = vpop.f32.mrb[3].mxu1 }
 0x30a   :  { %v307_v5 = vrot.slane %v305_v4, 6 }
 0x30b   :  { %v949_v1 = vmul.f32 -1.442695, %v298_v63 }
 0x30d   :  { %1010 = vpow2.f32 %v949_v1 }
 0x317   :  { %v1011_v2 = vpop.eup %1010 }
 0x318   :  { %v302_v3 = vadd.f32 1.0, %v1011_v2 }
 0x31a   :  { %1012 = vrcp.f32 %v302_v3 }
 0x324   :  { %v1013_v6 = vpop.eup %1012 }
 0x325   :  { %v309_v7 = vmul.f32 %v1013_v6, %v307_v5  ;;  %v312_v11 = vsub.f32 1.0, %v1013_v6  ;;  %v321_v14 = vmul.f32 %v1013_v6, %v319_v12 }
 0x327   :  { %v310_v8 = vadd.f32 %v309_v7, %v1248_v41 }
 0x329   :  { %1014 = vtanh.f32 %v310_v8 }
 0x333   :  { %v1015_v10 = vpop.eup %1014 }
 0x334   :  { %314 = vrot.lane.b32.xlu1 %v1015_v10, %s1155_s3 }
 0x3a6   :  { %v315_v13 = vpop.permute.xlu1 %314 }
 0x3a7   :  { %v317_v15 = vmul.f32 %v315_v13, %v312_v11 }
 0x3a9   :  { %v1310_v16 = vadd.f32 %v321_v14, %v317_v15 }
 0x3ab   :  { %v323_v17 = vpack.c.bf16 %v1310_v16, %v1310_v16  ;;  %v396_v51 = vrot.slane %v1310_v16, 6 }
 0x3ad   :  { %v325_v18 = vrot.slane %v323_v17, 1 }
 0x3af   :  { %326 = vrot.lane.b32.xlu1 %v325_v18, %s1155_s3 }
 0x421   :  { %v327_v21 = vpop.permute.xlu1 %326 }
 0x422   :  { %950 = vmatmul.mubr.msk.bf16.vlgmr.msra.gmra.mrb[4].mxu0 %vm93_vm0, %v327_v21 }
 0x423   :  { %486 = vmatpush1.bf16.msra.mxu0 %v1254_v45  ;;  %517 = vmatprep.mubr.bf16.mxu0 %v1154_v48 }
 0x424   :  { %487 = vmatprep.subr.bf16.mxu0 %v1256_v46 }
 0x427   :  { %488 = vmatpush1.bf16.msra.mxu0 %v1261_v47 }
 0x428   :  { %489 = vmatprep.subr.bf16.mxu0 %v1265_v49 }
 0x42b   :  { %490 = vmatpush1.bf16.msra.mxu0 %v1270_v50 }
 0x42c   :  { %491 = vmatprep.subr.bf16.mxu0 %v1273_v52 }
 0x42f   :  { %492 = vmatpush1.bf16.msra.mxu0 %v1279_v53 }
 0x430   :  { %706 = vmatprep.subr.bf16.mxu0 %v1252_v44 }
 0x4f5   :  { %v365_v22 = vpop.f32.mrb[4].mxu0 }
 0x4f6   :  { %v373_v23 = vrot.slane %v365_v22, 4  ;;  %v367_v24 = vpop.f32.mrb[5].mxu0 }
 0x4f7   :  { %v369_v25 = vpop.f32.mrb[6].mxu0  ;;  %v382_v34 = vadd.f32 %v1245_v39, %v367_v24 }
 0x4f8   :  { %v375_v26 = vadd.f32 %v373_v23, %v1236_v32  ;;  %v370_v28 = vpop.f32.mrb[7].mxu0 }
 0x4f9   :  { %v384_v35 = vrot.slane %v382_v34, 4 }
 0x4fa   :  { %v951_v29 = vmul.f32 -1.442695, %v375_v26 }
 0x4fc   :  { %1016 = vpow2.f32 %v951_v29 }
 0x506   :  { %v1017_v31 = vpop.eup %1016 }
 0x507   :  { %v379_v33 = vadd.f32 1.0, %v1017_v31 }
 0x509   :  { %1018 = vrcp.f32 %v379_v33 }
 0x513   :  { %v1019_v36 = vpop.eup %1018 }
 0x514   :  { %v386_v37 = vmul.f32 %v1019_v36, %v384_v35  ;;  %v389_v43 = vsub.f32 1.0, %v1019_v36  ;;  %v398_v55 = vmul.f32 %v1019_v36, %v396_v51  ;;  %v1378_v36 = vadd.f32 %v1317_v20, %v1240_v38 }
 0x516   :  { %v387_v40 = vadd.f32 %v386_v37, %v1248_v41 }
 0x518   :  { %1020 = vtanh.f32 %v387_v40 }
 0x522   :  { %v1021_v42 = vpop.eup %1020 }
 0x523   :  { %391 = vrot.lane.b32.xlu0 %v1021_v42, %s1155_s3 }
 0x595   :  { %v392_v54 = vpop.permute.xlu0 %391 }
 0x596   :  { %v394_v57 = vmul.f32 %v392_v54, %v389_v43 }
 0x598   :  { %v1336_v58 = vadd.f32 %v398_v55, %v394_v57 }
 0x59a   :  { %v400_v59 = vpack.c.bf16 %v1336_v58, %v1336_v58 }
 0x59c   :  { %v402_v60 = vrot.slane %v400_v59, 2 }
 0x59e   :  { %403 = vrot.lane.b32.xlu1 %v402_v60, %s1155_s3 }
 0x610   :  { %v404_v61 = vpop.permute.xlu1 %403 }
 0x611   :  { %952 = vmatmul.mubr.msk.bf16.vlgmr.msra.gmra.mrb[4].mxu1 %vm93_vm0, %v404_v61 }
 0x612   :  { %594 = vmatpush1.bf16.msra.mxu1 %v1254_v45  ;;  %625 = vmatprep.mubr.bf16.mxu1 %v1154_v48 }
 0x613   :  { %595 = vmatprep.subr.bf16.mxu1 %v1256_v46 }
 0x616   :  { %596 = vmatpush1.bf16.msra.mxu1 %v1261_v47 }
 0x617   :  { %597 = vmatprep.subr.bf16.mxu1 %v1265_v49 }
 0x61a   :  { %598 = vmatpush1.bf16.msra.mxu1 %v1270_v50 }
 0x61b   :  { %599 = vmatprep.subr.bf16.mxu1 %v1273_v52 }
 0x61e   :  { %600 = vmatpush1.bf16.msra.mxu1 %v1279_v53 }
 0x61f   :  { %815 = vmatprep.subr.bf16.mxu1 %v1252_v44 }
 0x6e4   :  { %v442_v62 = vpop.f32.mrb[4].mxu1 }
 0x6e5   :  { %v450_v63 = vrot.slane %v442_v62, 2  ;;  %v444_v0 = vpop.f32.mrb[5].mxu1 }
 0x6e6   :  { %v446_v1 = vpop.f32.mrb[6].mxu1  ;;  %v459_v7 = vadd.f32 %v1245_v39, %v444_v0 }
 0x6e7   :  { %v452_v2 = vadd.f32 %v450_v63, %v1236_v32  ;;  %v447_v3 = vpop.f32.mrb[7].mxu1  ;;  %v473_v32 = vrot.slane %v1336_v58, 6 }
 0x6e8   :  { %v461_v8 = vrot.slane %v459_v7, 2 }
 0x6e9   :  { %v953_v4 = vmul.f32 -1.442695, %v452_v2 }
 0x6eb   :  { %1022 = vpow2.f32 %v953_v4 }
 0x6f5   :  { %v1023_v5 = vpop.eup %1022 }
 0x6f6   :  { %v456_v6 = vadd.f32 1.0, %v1023_v5 }
 0x6f8   :  { %1024 = vrcp.f32 %v456_v6 }
 0x702   :  { %v1025_v9 = vpop.eup %1024 }
 0x703   :  { %v463_v10 = vmul.f32 %v1025_v9, %v461_v8  ;;  %v466_v12 = vsub.f32 1.0, %v1025_v9  ;;  %v475_v14 = vmul.f32 %v1025_v9, %v473_v32 }
 0x705   :  { %v464_v11 = vadd.f32 %v463_v10, %v1248_v41  ;;  %v1372_v41 = vadd.f32 %v1315_v19, %v1233_v30 }
 0x707   :  { %1026 = vtanh.f32 %v464_v11 }
 0x711   :  { %v1027_v44 = vpop.eup %1026 }
 0x712   :  { %468 = vrot.lane.b32.xlu0 %v1027_v44, %s1155_s3 }
 0x784   :  { %v469_v13 = vpop.permute.xlu0 %468 }
 0x785   :  { %v471_v15 = vmul.f32 %v469_v13, %v466_v12 }
 0x787   :  { %v1356_v17 = vadd.f32 %v475_v14, %v471_v15 }
 0x789   :  { %v477_v18 = vpack.c.bf16 %v1356_v17, %v1356_v17  ;;  %v544_v42 = vrot.slane %v1356_v17, 6 }
 0x78b   :  { %v479_v21 = vrot.slane %v477_v18, 3 }
 0x78d   :  { %480 = vrot.lane.b32.xlu1 %v479_v21, %s1155_s3 }
 0x7ff   :  { %v481_v22 = vpop.permute.xlu1 %480 }
 0x800   :  { %954 = vmatmul.mubr.msk.bf16.vlgmr.msra.gmra.mrb[8].mxu0 %vm93_vm0, %v481_v22 }
 0x801   :  { %707 = vmatpush1.bf16.msra.mxu0 %v1254_v45  ;;  %738 = vmatprep.mubr.bf16.mxu0 %v1154_v48 }
 0x802   :  { %708 = vmatprep.subr.bf16.mxu0 %v1256_v46 }
 0x805   :  { %709 = vmatpush1.bf16.msra.mxu0 %v1261_v47 }
 0x806   :  { %710 = vmatprep.subr.bf16.mxu0 %v1265_v49 }
 0x809   :  { %711 = vmatpush1.bf16.msra.mxu0 %v1270_v50 }
 0x80a   :  { %712 = vmatprep.subr.bf16.mxu0 %v1273_v52 }
 0x80d   :  { %713 = vmatpush1.bf16.msra.mxu0 %v1279_v53 }
 0x8d3   :  { %v519_v23 = vpop.f32.mrb[8].mxu0 }
 0x8d4   :  { %v526_v24 = vadd.f32 %v519_v23, %v1372_v41  ;;  %v521_v25 = vpop.f32.mrb[9].mxu0 }
 0x8d5   :  { %v523_v26 = vpop.f32.mrb[10].mxu0  ;;  %v533_v34 = vadd.f32 %v1245_v39, %v521_v25 }
 0x8d6   :  { %v955_v28 = vmul.f32 -1.442695, %v526_v24  ;;  %v524_v29 = vpop.f32.mrb[11].mxu0 }
 0x8d8   :  { %1028 = vpow2.f32 %v955_v28 }
 0x8e2   :  { %v1029_v31 = vpop.eup %1028 }
 0x8e3   :  { %v530_v33 = vadd.f32 1.0, %v1029_v31 }
 0x8e5   :  { %1030 = vrcp.f32 %v530_v33 }
 0x8ef   :  { %v1031_v35 = vpop.eup %1030 }
 0x8f0   :  { %v534_v30 = vmul.f32 %v1031_v35, %v533_v34  ;;  %v537_v40 = vsub.f32 1.0, %v1031_v35  ;;  %v546_v54 = vmul.f32 %v1031_v35, %v544_v42 }
 0x8f2   :  { %v535_v19 = vadd.f32 %v534_v30, %v1378_v36 }
 0x8f4   :  { %1032 = vtanh.f32 %v535_v19 }
 0x8fe   :  { %v1033_v37 = vpop.eup %1032 }
 0x8ff   :  { %539 = vrot.lane.b32.xlu0 %v1033_v37, %s1155_s3 }
 0x971   :  { %v540_v43 = vpop.permute.xlu0 %539 }
 0x972   :  { %v542_v55 = vmul.f32 %v540_v43, %v537_v40  ;;  %v883_v43 = vrot.slane %v1288_v56, 2 }
 0x974   :  { %v1385_v57 = vadd.f32 %v546_v54, %v542_v55 }
 0x976   :  { %v586_v38 = vpack.c.bf16 %v1385_v57, %v1385_v57  ;;  %v657_v3 = vrot.slane %v1385_v57, 6  ;;  %v566_v40 = vrot.slane %v1385_v57, 2 }
 0x978   :  { %588 = vrot.lane.b32.xlu1 %v586_v38, %s1155_s3 }
 0x9ea   :  { %v589_v20 = vpop.permute.xlu1 %588 }
 0x9eb   :  { %956 = vmatmul.mubr.msk.bf16.vlgmr.msra.gmra.mrb[8].mxu1 %vm93_vm0, %v589_v20 }
 0x9ec   :  { %816 = vmatpush1.bf16.msra.mxu1 %v1254_v45  ;;  %847 = vmatprep.mubr.bf16.mxu1 %v1154_v48 }
 0x9ed   :  { %817 = vmatprep.subr.bf16.mxu1 %v1256_v46 }
 0x9f0   :  { %818 = vmatpush1.bf16.msra.mxu1 %v1261_v47 }
 0x9f1   :  { %819 = vmatprep.subr.bf16.mxu1 %v1265_v49 }
 0x9f4   :  { %820 = vmatpush1.bf16.msra.mxu1 %v1270_v50 }
 0x9f5   :  { %821 = vmatprep.subr.bf16.mxu1 %v1273_v52 }
 0x9f8   :  { %822 = vmatpush1.bf16.msra.mxu1 %v1279_v53 }
 0xabe   :  { %v627_v59 = vpop.f32.mrb[8].mxu1 }
 0xabf   :  { %v635_v60 = vrot.slane %v627_v59, 6  ;;  %v629_v61 = vpop.f32.mrb[9].mxu1 }
 0xac0   :  { %v631_v62 = vpop.f32.mrb[10].mxu1  ;;  %v644_v47 = vadd.f32 %v1245_v39, %v629_v61 }
 0xac1   :  { %v637_v45 = vadd.f32 %v635_v60, %v1372_v41  ;;  %v632_v63 = vpop.f32.mrb[11].mxu1 }
 0xac2   :  { %v646_v49 = vrot.slane %v644_v47, 6 }
 0xac3   :  { %v957_v48 = vmul.f32 -1.442695, %v637_v45 }
 0xac5   :  { %1034 = vpow2.f32 %v957_v48 }
 0xacf   :  { %v1035_v46 = vpop.eup %1034 }
 0xad0   :  { %v641_v0 = vadd.f32 1.0, %v1035_v46 }
 0xad2   :  { %1036 = vrcp.f32 %v641_v0 }
 0xadc   :  { %v1037_v50 = vpop.eup %1036 }
 0xadd   :  { %v648_v1 = vmul.f32 %v1037_v50, %v646_v49  ;;  %v651_v2 = vsub.f32 1.0, %v1037_v50  ;;  %v659_v5 = vmul.f32 %v1037_v50, %v657_v3 }
 0xadf   :  { %v649_v52 = vadd.f32 %v648_v1, %v1378_v36 }
 0xae1   :  { %1038 = vtanh.f32 %v649_v52  ;;  %v661_v52 = vrot.slane %v1336_v58, 2 }
 0xaeb   :  { %v1039_v53 = vpop.eup %1038 }
 0xaec   :  { %653 = vrot.lane.b32.xlu0 %v1039_v53, %s1155_s3  ;;  %v1157_v53 = vmov 1983009808  }
 0xb5e   :  { %v654_v4 = vpop.permute.xlu0 %653 }
 0xb5f   :  { %v656_v6 = vmul.f32 %v654_v4, %v651_v2 }
 0xb61   :  { %v1404_v7 = vadd.f32 %v659_v5, %v656_v6 }
 0xb63   :  { %v698_v8 = vpack.c.bf16 %v1404_v7, %v1404_v7  ;;  %v681_v31 = vrot.slane %v1404_v7, 6 }
 0xb65   :  { %v700_v9 = vrot.slane %v698_v8, 1 }
 0xb67   :  { %701 = vrot.lane.b32.xlu1 %v700_v9, %s1155_s3 }
 0xbd9   :  { %v702_v10 = vpop.permute.xlu1 %701 }
 0xbda   :  { %958 = vmatmul.mubr.msk.bf16.vlgmr.msra.gmra.mrb[12].mxu0 %vm93_vm0, %v702_v10 }
 0xcad   :  { %v740_v11 = vpop.f32.mrb[12].mxu0 }
 0xcae   :  { %v748_v44 = vrot.slane %v740_v11, 4  ;;  %v742_v12 = vpop.f32.mrb[13].mxu0 }
 0xcaf   :  { %v744_v32 = vpop.f32.mrb[14].mxu0  ;;  %v757_v22 = vadd.f32 %v1245_v39, %v742_v12 }
 0xcb0   :  { %v750_v13 = vadd.f32 %v748_v44, %v1372_v41  ;;  %v745_v14 = vpop.f32.mrb[15].mxu0 }
 0xcb1   :  { %v759_v23 = vrot.slane %v757_v22, 4 }
 0xcb2   :  { %v959_v15 = vmul.f32 -1.442695, %v750_v13 }
 0xcb4   :  { %1040 = vpow2.f32 %v959_v15 }
 0xcbe   :  { %v1041_v18 = vpop.eup %1040 }
 0xcbf   :  { %v754_v21 = vadd.f32 1.0, %v1041_v18 }
 0xcc1   :  { %1042 = vrcp.f32 %v754_v21 }
 0xccb   :  { %v1043_v24 = vpop.eup %1042 }
 0xccc   :  { %v761_v25 = vmul.f32 %v1043_v24, %v759_v23  ;;  %v764_v29 = vsub.f32 1.0, %v1043_v24  ;;  %v771_v35 = vmul.f32 %v1043_v24, %v681_v31 }
 0xcce   :  { %v762_v26 = vadd.f32 %v761_v25, %v1378_v36 }
 0xcd0   :  { %1044 = vtanh.f32 %v762_v26 }
 0xcda   :  { %v1045_v28 = vpop.eup %1044 }
 0xcdb   :  { %766 = vrot.lane.b32.xlu0 %v1045_v28, %s1155_s3 }
 0xd4d   :  { %v767_v33 = vpop.permute.xlu0 %766 }
 0xd4e   :  { %v769_v34 = vmul.f32 %v767_v33, %v764_v29 }
 0xd50   :  { %v1415_v30 = vadd.f32 %v771_v35, %v769_v34 }
 0xd52   :  { %v807_v19 = vpack.c.bf16 %v1415_v30, %v1415_v30  ;;  %v789_v54 = vrot.slane %v1415_v30, 2  ;;  %v879_v3 = vrot.slane %v1415_v30, 6 }
 0xd54   :  { %v809_v37 = vrot.slane %v807_v19, 2 }
 0xd56   :  { %810 = vrot.lane.b32.xlu1 %v809_v37, %s1155_s3 }
 0xd5a   :  { %567 = vrot.lane.b32.xlu1 %v566_v40, %s1156_s4 }
 0xd5e   :  { %884 = vrot.lane.b32.xlu1 %v883_v43, %s1156_s4 }
 0xd62   :  { %790 = vrot.lane.b32.xlu1 %v789_v54, %s1156_s4 }
 0xd66   :  { %682 = vrot.lane.b32.xlu1 %v681_v31, %s1156_s4 }
 0xdc8   :  { %v811_v55 = vpop.permute.xlu1 %810 }
 0xdc9   :  { %960 = vmatmul.mubr.msk.bf16.vlgmr.msra.gmra.mrb[12].mxu1 %vm93_vm0, %v811_v55 }
 0xe9c   :  { %v849_v38 = vpop.f32.mrb[12].mxu1 }
 0xe9d   :  { %v857_v20 = vrot.slane %v849_v38, 2  ;;  %v851_v59 = vpop.f32.mrb[13].mxu1 }
 0xe9e   :  { %v853_v60 = vpop.f32.mrb[14].mxu1  ;;  %v866_v46 = vadd.f32 %v1245_v39, %v851_v59  ;;  %v554_v39 = vunpack.c.l.s4 %v1157_v53 }
 0xe9f   :  { %v859_v61 = vadd.f32 %v857_v20, %v1372_v41  ;;  %v854_v62 = vpop.f32.mrb[15].mxu1  ;;  %v568_v41 = vpop.permute.xlu1 %567 }
 0xea0   :  { %v868_v0 = vrot.slane %v866_v46, 2  ;;  %v555_v5 = vunpack.c.0.s8 %v554_v39  ;;  %v570_v6 = vadd.f32 %v568_v41, %v1356_v17 }
 0xea1   :  { %v961_v45 = vmul.f32 -1.442695, %v859_v61 }
 0xea2   :  { %v558_v44 = vsub.s32 %v555_v5, %v1227_v27  ;;  %v572_v12 = vcombine.high %v570_v6, %v570_v6 }
 0xea3   :  { %1046 = vpow2.f32 %v961_v45  ;;  %v885_v4 = vpop.permute.xlu1 %884 }
 0xea4   :  { %v579_v18 = vrot.slane %v572_v12, %v558_v44 }
 0xea6   :  { %v580_v27 = vcombine.high %v579_v18, %v579_v18 }
 0xead   :  { %v1047_v63 = vpop.eup %1046 }
 0xeae   :  { %v863_v48 = vadd.f32 1.0, %v1047_v63 }
 0xeb0   :  { %1048 = vrcp.f32 %v863_v48 }
 0xeba   :  { %v1049_v47 = vpop.eup %1048 }
 0xebb   :  { %v870_v49 = vmul.f32 %v1049_v47, %v868_v0  ;;  %v873_v2 = vsub.f32 1.0, %v1049_v47  ;;  %v881_v8 = vmul.f32 %v1049_v47, %v879_v3 }
 0xebd   :  { %v871_v50 = vadd.f32 %v870_v49, %v1378_v36 }
 0xebf   :  { %1050 = vtanh.f32 %v871_v50 }
 0xec9   :  { %v1051_v1 = vpop.eup %1050 }
 0xeca   :  { %875 = vrot.lane.b32.xlu0 %v1051_v1, %s1155_s3 }
 0xece   :  { %662 = vrot.lane.b32.xlu0 %v661_v52, %s1156_s4 }
 0xed2   :  { %548 = vrot.lane.b32.xlu0 %v544_v42, %s1156_s4  ;;  %v791_v42 = vpop.permute.xlu1 %790 }
 0xed3   :  { %v793_v21 = vadd.f32 %v791_v42, %v1310_v16 }
 0xed5   :  { %v801_v25 = vrot.slane %v793_v21, %v558_v44 }
 0xed6   :  { %v683_v29 = vpop.permute.xlu1 %682 }
 0xed7   :  { %v802_v28 = vcombine.high %v801_v25, %v801_v25  ;;  %v685_v31 = vadd.f32 %v683_v29, %v1336_v58 }
 0xed9   :  { %v687_v34 = vcombine.high %v685_v31, %v685_v31 }
 0xedb   :  { %v694_v43 = vrot.slane %v687_v34, %v558_v44 }
 0xf3c   :  { %v876_v36 = vpop.permute.xlu0 %875 }
 0xf3d   :  { %v878_v9 = vmul.f32 %v876_v36, %v873_v2 }
 0xf3f   :  { %v882_v10 = vadd.f32 %v881_v8, %v878_v9 }
 0xf40   :  { %v663_v11 = vpop.permute.xlu0 %662 }
 0xf41   :  { %v903_v32 = vrot.slane %v882_v10, 6  ;;  %v887_v13 = vadd.f32 %v885_v4, %v882_v10  ;;  %v665_v14 = vadd.f32 %v663_v11, %v1404_v7 }
 0xf43   :  { %904 = vrot.lane.b32.xlu0 %v903_v32, %s1156_s4  ;;  %v889_v22 = vcombine.high %v887_v13, %v887_v13  ;;  %v673_v23 = vrot.slane %v665_v14, %v558_v44 }
 0xf44   :  { %v549_v15 = vpop.permute.xlu0 %548 }
 0xf45   :  { %v551_v17 = vadd.f32 %v549_v15, %v1385_v57  ;;  %v674_v7 = vcombine.high %v673_v23, %v673_v23  ;;  %v896_v26 = vrot.slane %v889_v22, %v558_v44 }
 0xf47   :  { %v559_v24 = vrot.slane %v551_v17, %v558_v44  ;;  %773 = vrot.lane.b32.xlu0 %v396_v51, %s1156_s4  ;;  %v897_v57 = vcombine.high %v896_v26, %v896_v26 }
 0xf49   :  { %560 = vrot.lane.b32.xlu1 %v559_v24, %s1155_s3 }
 0xf4b   :  { %581 = vrot.lane.b32.xlu0 %v580_v27, %s1158_s9 }
 0xf4d   :  { %675 = vrot.lane.b32.xlu1 %v674_v7, %s1156_s4 }
 0xf4f   :  { %803 = vrot.lane.b32.xlu0 %v802_v28, %s1156_s4 }
 0xf51   :  { %898 = vrot.lane.b32.xlu1 %v897_v57, %s1158_s9 }
 0xfb5   :  { %v905_v16 = vpop.permute.xlu0 %904 }
 0xfb6   :  { %v907_v51 = vadd.f32 %v905_v16, %v1288_v56 }
 0xfb8   :  { %v915_v33 = vrot.slane %v907_v51, %v558_v44 }
 0xfb9   :  { %v774_v35 = vpop.permute.xlu0 %773 }
 0xfba   :  { %v776_v19 = vadd.f32 %v774_v35, %v1415_v30  ;;  %916 = vrot.lane.b32.xlu0 %v915_v33, %s1155_s3 }
 0xfbb   :  { %v561_v37 = vpop.permute.xlu1 %560 }
 0xfbc   :  { %v778_v40 = vcombine.high %v776_v19, %v776_v19  ;;  %564 = vst.msk [vmem:[#allocation8 + $0x2] sm:$0x3] %vm563_vm1, %v561_v37 }
 0xfbd   :  { %v582_v54 = vpop.permute.xlu0 %581 }
 0xfbe   :  { %v785_v58 = vrot.slane %v778_v40, %v558_v44  ;;  %585 = vst.msk [vmem:[#allocation8] sm:$0x3] %vm584_vm2, %v582_v54 }
 0xfbf   :  { %697 = vst.msk [vmem:[#allocation8] sm:$0x3] %vm696_vm3, %v694_v43  ;;  %v676_v56 = vpop.permute.xlu1 %675 }
 0xfc0   :  { %679 = vst.msk [vmem:[#allocation8 + $0x2] sm:$0x3] %vm678_vm4, %v676_v56 }
 0xfc1   :  { %787 = vst.msk [vmem:[#allocation8 + $0x2] sm:$0x3] %vm696_vm3, %v785_v58  ;;  %v804_v55 = vpop.permute.xlu0 %803 }
 0xfc2   :  { %806 = vst.msk [vmem:[#allocation8] sm:$0x3] %vm678_vm4, %v804_v55 }
 0xfc3   :  { %v899_v30 = vpop.permute.xlu1 %898 }
 0xfc4   :  { %901 = vst.msk [vmem:[#allocation8 + $0x2] sm:$0x3] %vm584_vm2, %v899_v30 }
0x102c   :  { %v917_v38 = vpop.permute.xlu0 %916 }
0x102d   :  { %919 = vst.msk [vmem:[#allocation8] sm:$0x3] %vm563_vm1, %v917_v38 }
0x102e   :  { %1129 = shalt.err (!%p1126_p0)
}
0x102f   :  { %s1130_s15 = scalar_lea.hbm %s1475_s5, 64 }
0x1030   :  { %p1131_p1 = scmp.ne.s32.totalorder %s1475_s5, %s1130_s15  ;;  %p1134_p2 = scmp.lt.u32.totalorder %s1130_s15, %s1475_s5 }
0x1032   :  { %p1136_p3 = pnand %p1134_p2, %p1131_p1 }
0x1034   :  { %1139 = shalt.err (!%p1136_p3)
}
0x1035   :  { %929 = dma.vmem_to_hbm [thread:$0]  %s927_s11, 64, %s1475_s5, [#allocation4]  }
0x1036   :  { %1144 = dma.done.wait [#allocation4], 64  }
0x1037   :  { %1145 = vsyncadd [#allocation4], 4294967232 }
0x1038   :  { %933 = vsyncpa [#allocation3], 1 }
0x1039   :  { %934 = vsyncpa [#allocation6], 1 }
0x103a   :  { %935 = vsyncpa [#allocation4], 1 }

</bundles_post_ra>
